<compile_context>
chip_gen: v7x
topology: tpu7x:2x2x1
jax: 0.10.0
libtpu: 0.0.40
codegen_flags: <defaults>
</compile_context>

<pallas_src>
import functools
import numpy as np
import jax
import jax.numpy as jnp
from jax.experimental import pallas as pl
from jax.experimental.pallas import tpu as pltpu

# ----------------------------------------------------------------------------
# Model configuration (synthetic, deterministic). The module fixes:
#   24 joints, 300 shape coeffs, 207 = 23*9 pose coeffs.
# ----------------------------------------------------------------------------
NUM_JOINTS = 24
NUM_BETAS = 300
NUM_POSE_FEATS = 207                       # 23 * 9
NUM_ACT = NUM_BETAS + NUM_POSE_FEATS       # 507 (fused contraction dim)
NUM_ACT_PAD = 512                          # zero-padded to an (8,128)-friendly K

ORIG_VERT_NUM = 192
ADDED_VERT_NUM = 64
TOTAL_VERT_NUM = ORIG_VERT_NUM + ADDED_VERT_NUM  # 256 (multiple of 128)
V3 = TOTAL_VERT_NUM * 3                          # 768 (multiple of 128)

# SMPL kinematic tree parents for joints 1..23 (joint i's parent = PARENT[i-1]).
PARENT = np.array(
    [0, 0, 0, 1, 2, 3, 4, 5, 6, 7, 8, 9, 9, 9, 12, 13, 14, 16, 17, 18, 19, 20, 21],
    dtype=np.int64,
)
# PARENT_OF[i] = parent of joint i (entry 0 unused).
PARENT_OF = np.concatenate([np.array([0], dtype=np.int64), PARENT])
# Tree-depth levels happen to be contiguous joint ranges: [lo, hi).
LEVEL_RANGES = ((1, 4), (4, 7), (7, 10), (10, 15), (15, 18), (18, 20), (20, 22), (22, 24))


# ----------------------------------------------------------------------------
# Small per-joint math (plain JAX glue; matches the PyTorch reference exactly).
# ----------------------------------------------------------------------------
def quat2mat(quat):
    norm_quat = quat / jnp.linalg.norm(quat, axis=1, keepdims=True)
    w, x, y, z = norm_quat[:, 0], norm_quat[:, 1], norm_quat[:, 2], norm_quat[:, 3]
    w2, x2, y2, z2 = w * w, x * x, y * y, z * z
    wx, wy, wz = w * x, w * y, w * z
    xy, xz, yz = x * y, x * z, y * z
    rot = jnp.stack(
        [
            w2 + x2 - y2 - z2, 2 * xy - 2 * wz, 2 * wy + 2 * xz,
            2 * wz + 2 * xy, w2 - x2 + y2 - z2, 2 * yz - 2 * wx,
            2 * xz - 2 * wy, 2 * wx + 2 * yz, w2 - x2 - y2 + z2,
        ],
        axis=1,
    ).reshape(-1, 3, 3)
    return rot


def rodrigues(theta):
    l1norm = jnp.linalg.norm(theta + 1e-8, axis=1)
    angle = l1norm[:, None]
    normalized = theta / angle
    angle = angle * 0.5
    v_cos = jnp.cos(angle)
    v_sin = jnp.sin(angle)
    quat = jnp.concatenate([v_cos, v_sin * normalized], axis=1)
    return quat2mat(quat)


# ----------------------------------------------------------------------------
# Fused Pallas kernel: blendshapes + linear blend skinning in one body.
#
#   vp[b, c*V + v] = (beta||lrotmin||0) @ fused_dirs_T + v_template_cm     (MXU)
#   T[b*16 + d*4 + r, v] = sum_j G[b, j, r, d] * weights[v, j]             (MXU)
#   out[b, r, v] = T[0+r]*x + T[4+r]*y + T[8+r]*z + T[12+r]                (VPU)
#
# All blocks are full arrays; grid has a single step (total footprint < 2 MB).
# ----------------------------------------------------------------------------
def fused_kernel(act_ref, dirs_ref, vt_ref, wT_ref, GT_ref, out_ref):
    B = out_ref.shape[0]
    V = out_ref.shape[2]

    # Fused shape + pose blendshapes, coordinate-major: vp[b, c*V + v].
    # dirs are stored bf16; upcast and let the MXU accumulate in f32 (same
    # numerics as an f32-stored operand under default MXU precision).
    vp = jnp.dot(act_ref[...], dirs_ref[...].astype(jnp.float32),
                 preferred_element_type=jnp.float32) + vt_ref[...]      # (B, 3V)

    # Per-vertex transforms, rows ordered b*16 + d*4 + r: T[row, v] = M_bv[r, d].
    T = jnp.dot(GT_ref[...], wT_ref[...],
                preferred_element_type=jnp.float32)                     # (B*16, V)

    for b in range(B):                       # B is tiny & static -> unrolled
        Tb = T[16 * b:16 * (b + 1), :]       # (16, V) contiguous sublane slice
        vx = vp[b:b + 1, 0:V]                # (1, V) lane-aligned slices
        vy = vp[b:b + 1, V:2 * V]
        vz = vp[b:b + 1, 2 * V:3 * V]
        # NOTE: the homogeneous coordinate of v_posed is exactly 1 by
        # construction, so the translation column (rows 12:15) is added as-is.
        out_ref[b, :, :] = (Tb[0:3, :] * vx + Tb[4:7, :] * vy
                            + Tb[8:11, :] * vz + Tb[12:15, :])


def tetra_smpl_pallas(act_pad, fused_dirs_T, v_template_cm, weights_T, G_flat):
    B, K = act_pad.shape
    V = weights_T.shape[1]
    v3 = fused_dirs_T.shape[1]
    return pl.pallas_call(
        fused_kernel,
        out_shape=jax.ShapeDtypeStruct((B, 3, V), jnp.float32),
        grid_spec=pltpu.PrefetchScalarGridSpec(
            num_scalar_prefetch=0,
            grid=(1,),
            in_specs=[
                pl.BlockSpec((B, K), lambda i: (0, 0)),
                pl.BlockSpec((K, v3), lambda i: (0, 0)),
                pl.BlockSpec((1, v3), lambda i: (0, 0)),
                pl.BlockSpec((NUM_JOINTS, V), lambda i: (0, 0)),
                pl.BlockSpec((B * 16, NUM_JOINTS), lambda i: (0, 0)),
            ],
            out_specs=pl.BlockSpec((B, 3, V), lambda i: (0, 0, 0)),
        ),
        compiler_params=pltpu.CompilerParams(
            dimension_semantics=("arbitrary",)),
    )(act_pad, fused_dirs_T, v_template_cm, weights_T, G_flat)


# ----------------------------------------------------------------------------
# TetraSMPL forward (Pallas version).
# ----------------------------------------------------------------------------
def tetra_smpl_forward(pose, beta, params):
    B = pose.shape[0]
    hi_prec = jax.lax.Precision.HIGHEST

    # Rotation matrices from axis-angle pose (tiny per-joint math, plain JAX).
    if pose.ndim == 4:
        R = pose
    else:
        R = rodrigues(pose.reshape(-1, 3)).reshape(B, NUM_JOINTS, 3, 3)
    lrotmin = (R[:, 1:, :, :] - jnp.eye(3, dtype=jnp.float32)).reshape(B, -1)

    # Activation for the fused blendshape contraction, zero-padded 507 -> 512.
    act = jnp.concatenate(
        [beta, lrotmin, jnp.zeros((B, NUM_ACT_PAD - NUM_ACT), jnp.float32)],
        axis=1)                                                     # (B, 512)

    # Joint locations directly from beta (J_regressor folded into shapedirs
    # offline; mathematically identical to J_regressor @ v_shaped).
    J = params["J_template"][None] + jnp.einsum(
        "bk,kjc->bjc", beta, params["J_shapedirs"], precision=hi_prec)

    # Relative joint offsets + local transforms.
    J_rel = J.at[:, 1:, :].set(J[:, 1:, :] - J[:, PARENT, :])
    G_local = jnp.concatenate([R, J_rel[:, :, :, None]], axis=-1)   # (B,24,3,4)
    pad_row = jnp.broadcast_to(
        jnp.array([0.0, 0.0, 0.0, 1.0], dtype=jnp.float32).reshape(1, 1, 1, 4),
        (B, NUM_JOINTS, 1, 4))
    G_local = jnp.concatenate([G_local, pad_row], axis=2)           # (B,24,4,4)

    # Kinematic chain, batched per tree-depth level (8 matmuls instead of 23).
    G_chain = G_local[:, 0:1]                                       # (B,1,4,4)
    for lo, hi_j in LEVEL_RANGES:
        par = PARENT_OF[lo:hi_j]                                    # static, all < lo
        G_par = jnp.take(G_chain, par, axis=1)                      # (B,n,4,4)
        G_new = jnp.matmul(G_par, G_local[:, lo:hi_j], precision=hi_prec)
        G_chain = jnp.concatenate([G_chain, G_new], axis=1)
    G = G_chain                                                     # (B,24,4,4)

    # Remove rest-pose joint locations.
    rest = jnp.concatenate(
        [J, jnp.zeros((B, NUM_JOINTS, 1), jnp.float32)], axis=2
    ).reshape(B, NUM_JOINTS, 4, 1)
    rest = jnp.concatenate(
        [jnp.zeros((B, NUM_JOINTS, 4, 3), jnp.float32), rest], axis=-1)
    rest = jnp.matmul(G, rest, precision=hi_prec)
    G = G - rest

    # Column(d)-major flatten: row index = b*16 + d*4 + r  (GT[row, j] = G[b,j,r,d]).
    G_flat = jnp.transpose(G, (0, 3, 2, 1)).reshape(B * 16, NUM_JOINTS)

    # --- single fused Pallas kernel: blendshapes + skinning. ---
    v_out_3v = tetra_smpl_pallas(
        act, params["fused_dirs_T"], params["v_template_cm"],
        params["weights_T"], G_flat)                                # (B, 3, V)

    # TODO(synk): if the consumer accepts coordinate-major (B, 3, V), drop this
    # transpose (the kernel already emits the lane-dense layout).
    return jnp.transpose(v_out_3v, (0, 2, 1))                       # (B, V, 3)


# ----------------------------------------------------------------------------
# Pure-JAX reference (faithful to the PyTorch module; correctness check only).
# The tiny 4x4 / joint-regression math runs at HIGHEST precision so the only
# kernel-vs-reference difference is the (shared) MXU rounding of the two dots.
# ----------------------------------------------------------------------------
def tetra_smpl_reference(pose, beta, params):
    B = pose.shape[0]
    V = params["v_template"].shape[0]
    hi_prec = jax.lax.Precision.HIGHEST
    shapedirs_flat = params["shapedirs"].reshape(-1, NUM_BETAS)       # (V3,300)
    posedirs_flat = params["posedirs"].reshape(-1, NUM_POSE_FEATS)    # (V3,207)

    v_shaped = (beta @ shapedirs_flat.T).reshape(B, V, 3) + params["v_template"][None]
    J = jnp.einsum("jv,bvc->bjc", params["J_regressor"], v_shaped, precision=hi_prec)

    R = rodrigues(pose.reshape(-1, 3)).reshape(B, NUM_JOINTS, 3, 3)
    lrotmin = (R[:, 1:, :, :] - jnp.eye(3, dtype=jnp.float32)).reshape(B, -1)
    v_posed = v_shaped + (lrotmin @ posedirs_flat.T).reshape(B, V, 3)

    J_rel = J.at[:, 1:, :].set(J[:, 1:, :] - J[:, PARENT, :])
    G_local = jnp.concatenate([R, J_rel[:, :, :, None]], axis=-1)
    pad_row = jnp.broadcast_to(
        jnp.array([0.0, 0.0, 0.0, 1.0], dtype=jnp.float32).reshape(1, 1, 1, 4),
        (B, NUM_JOINTS, 1, 4))
    G_local = jnp.concatenate([G_local, pad_row], axis=2)
    G_list = [G_local[:, 0]]
    for i in range(1, NUM_JOINTS):
        G_list.append(jnp.matmul(G_list[int(PARENT[i - 1])], G_local[:, i],
                                 precision=hi_prec))
    G = jnp.stack(G_list, axis=1)
    rest = jnp.concatenate(
        [J, jnp.zeros((B, NUM_JOINTS, 1), jnp.float32)], axis=2
    ).reshape(B, NUM_JOINTS, 4, 1)
    rest = jnp.concatenate(
        [jnp.zeros((B, NUM_JOINTS, 4, 3), jnp.float32), rest], axis=-1)
    rest = jnp.matmul(G, rest, precision=hi_prec)
    G = G - rest

    T = jnp.einsum("vj,bje->bve", params["weights"],
                   G.reshape(B, NUM_JOINTS, 16)).reshape(B, V, 4, 4)
    rest_shape_h = jnp.concatenate(
        [v_posed, jnp.ones_like(v_posed[:, :, :1])], axis=-1)
    v = jnp.matmul(T, rest_shape_h[:, :, :, None], precision=hi_prec)[:, :, :3, 0]
    return v


# ----------------------------------------------------------------------------
# Deterministic synthetic parameter construction (with kernel-ready layouts).
# ----------------------------------------------------------------------------
def make_params(key):
    ks = jax.random.split(key, 5)
    V = TOTAL_VERT_NUM
    v_template = jax.random.normal(ks[0], (V, 3), jnp.float32) * 0.5
    shapedirs = jax.random.normal(ks[1], (V, 3, NUM_BETAS), jnp.float32) * 0.01
    posedirs = jax.random.normal(ks[2], (V, 3, NUM_POSE_FEATS), jnp.float32) * 0.01
    J_regressor = jax.nn.softmax(
        jax.random.normal(ks[3], (NUM_JOINTS, V), jnp.float32), axis=1)
    weights = jax.nn.softmax(
        jax.random.normal(ks[4], (V, NUM_JOINTS), jnp.float32) * 2.0, axis=1)

    # Coordinate-major (3, V) flattening: flat column index = c * V + v.
    shapedirs_cm = jnp.transpose(shapedirs, (2, 1, 0)).reshape(NUM_BETAS, 3 * V)
    posedirs_cm = jnp.transpose(posedirs, (2, 1, 0)).reshape(NUM_POSE_FEATS, 3 * V)
    # Fused + zero-padded to K=512 for clean (8,128) tiles; stored bf16 to halve
    # the dominant HBM read (the MXU rounds f32 operands to bf16 at default
    # precision anyway, so this does not change the dot's numerics).
    fused_dirs_T = jnp.concatenate(
        [shapedirs_cm, posedirs_cm,
         jnp.zeros((NUM_ACT_PAD - NUM_ACT, 3 * V), jnp.float32)], axis=0
    ).astype(jnp.bfloat16)                                           # (512, 3V)
    v_template_cm = v_template.T.reshape(1, 3 * V)

    # Joint regressor folded into the shape basis (computed once, offline).
    hi_prec = jax.lax.Precision.HIGHEST
    J_template = jnp.einsum("jv,vc->jc", J_regressor, v_template, precision=hi_prec)
    J_shapedirs = jnp.einsum("jv,vck->kjc", J_regressor, shapedirs, precision=hi_prec)

    return {
        "v_template": v_template,
        "shapedirs": shapedirs,
        "posedirs": posedirs,
        "J_regressor": J_regressor,
        "weights": weights,
        # Pre-arranged layouts for the fused Pallas kernel:
        "fused_dirs_T": fused_dirs_T,      # (512, 3V), coord-major, bf16
        "v_template_cm": v_template_cm,    # (1, 3V),   coord-major, f32
        "weights_T": weights.T,            # (24, V)
        "J_template": J_template,          # (24, 3)
        "J_shapedirs": J_shapedirs,        # (300, 24, 3)
    }


# ----------------------------------------------------------------------------
# Main
# ----------------------------------------------------------------------------
if __name__ == "__main__":
    key = jax.random.PRNGKey(0)
    k_param, k_pose, k_beta = jax.random.split(key, 3)

    params = make_params(k_param)

    B = 2
    pose = jax.random.normal(k_pose, (B, NUM_JOINTS * 3), jnp.float32) * 0.2
    beta = jax.random.normal(k_beta, (B, NUM_BETAS), jnp.float32) * 0.5

    fwd = jax.jit(functools.partial(tetra_smpl_forward, params=params))
    verts = jax.block_until_ready(fwd(pose, beta))

    ref = jax.block_until_ready(tetra_smpl_reference(pose, beta, params))
    assert verts.shape == (B, TOTAL_VERT_NUM, 3)
    max_err = float(jnp.max(jnp.abs(verts - ref)))
    # Tolerance covers the default (bf16-pass) MXU precision of the two fused
    # dots and the bf16-stored direction matrix, relative to the HIGHEST-
    # precision reference glue; the reassociations (fused dirs, folded joint
    # regressor, level-batched chain) are mathematically exact.
    assert jnp.allclose(verts, ref, atol=3e-3, rtol=3e-3), max_err

    print("KERNEL_OK")
</pallas_src>

<mosaic_0001>
module attributes {stable_mosaic.version = 11 : i64} {
  func.func @fused_kernel(%arg0: i32, %arg1: memref<2x512xf32, #tpu.memory_space<vmem>>, %arg2: memref<512x768xbf16, #tpu.memory_space<vmem>>, %arg3: memref<1x768xf32, #tpu.memory_space<vmem>>, %arg4: memref<24x256xf32, #tpu.memory_space<vmem>>, %arg5: memref<32x24xf32, #tpu.memory_space<vmem>>, %arg6: memref<2x3x256xf32, #tpu.memory_space<vmem>>) attributes {dimension_semantics = [#tpu.dimension_semantics<arbitrary>], iteration_bounds = array<i64: 1>, scalar_prefetch = 0 : i64, scratch_operands = 0 : i64, tpu.core_type = #tpu.core_type<tc>, window_params = [{pipeline_mode = #tpu.pipeline_mode<synchronous>, transform_indices = @transform_0, window_bounds = array<i64: 2, 512>}, {pipeline_mode = #tpu.pipeline_mode<synchronous>, transform_indices = @transform_1, window_bounds = array<i64: 512, 768>}, {pipeline_mode = #tpu.pipeline_mode<synchronous>, transform_indices = @transform_2, window_bounds = array<i64: 1, 768>}, {pipeline_mode = #tpu.pipeline_mode<synchronous>, transform_indices = @transform_3, window_bounds = array<i64: 24, 256>}, {pipeline_mode = #tpu.pipeline_mode<synchronous>, transform_indices = @transform_4, window_bounds = array<i64: 32, 24>}, {pipeline_mode = #tpu.pipeline_mode<synchronous>, transform_indices = @transform_5, window_bounds = array<i64: 2, 3, 256>}]} {
    %c0 = arith.constant 0 : index
    %c0_0 = arith.constant 0 : index
    %0 = vector.load %arg1[%c0, %c0_0] : memref<2x512xf32, #tpu.memory_space<vmem>>, vector<2x512xf32>
    %c0_1 = arith.constant 0 : index
    %c0_2 = arith.constant 0 : index
    %1 = vector.load %arg2[%c0_1, %c0_2] : memref<512x768xbf16, #tpu.memory_space<vmem>>, vector<512x768xbf16>
    %2 = arith.extf %1 : vector<512x768xbf16> to vector<512x768xf32>
    %cst = arith.constant dense<0.000000e+00> : vector<2x768xf32>
    %3 = tpu.matmul %0, %2, %cst {dimension_numbers = #tpu.dot_dimension_numbers<[1], [0], [0], [1], [0, 0, 1, 1], [], []>} : vector<2x512xf32>, vector<512x768xf32>, vector<2x768xf32> -> vector<2x768xf32>
    %c0_3 = arith.constant 0 : index
    %c0_4 = arith.constant 0 : index
    %4 = vector.load %arg3[%c0_3, %c0_4] : memref<1x768xf32, #tpu.memory_space<vmem>>, vector<1x768xf32>
    %5 = vector.broadcast %4 : vector<1x768xf32> to vector<2x768xf32>
    %6 = arith.addf %3, %5 : vector<2x768xf32>
    %c0_5 = arith.constant 0 : index
    %c0_6 = arith.constant 0 : index
    %7 = vector.load %arg5[%c0_5, %c0_6] : memref<32x24xf32, #tpu.memory_space<vmem>>, vector<32x24xf32>
    %c0_7 = arith.constant 0 : index
    %c0_8 = arith.constant 0 : index
    %8 = vector.load %arg4[%c0_7, %c0_8] : memref<24x256xf32, #tpu.memory_space<vmem>>, vector<24x256xf32>
    %cst_9 = arith.constant dense<0.000000e+00> : vector<32x256xf32>
    %9 = tpu.matmul %7, %8, %cst_9 {dimension_numbers = #tpu.dot_dimension_numbers<[1], [0], [0], [1], [0, 0, 1, 1], [], []>} : vector<32x24xf32>, vector<24x256xf32>, vector<32x256xf32> -> vector<32x256xf32>
    %10 = vector.extract_strided_slice %9 {offsets = [0, 0], sizes = [16, 256], strides = [1, 1]} : vector<32x256xf32> to vector<16x256xf32>
    %11 = vector.extract_strided_slice %6 {offsets = [0, 0], sizes = [1, 256], strides = [1, 1]} : vector<2x768xf32> to vector<1x256xf32>
    %12 = vector.extract_strided_slice %6 {offsets = [0, 256], sizes = [1, 256], strides = [1, 1]} : vector<2x768xf32> to vector<1x256xf32>
    %13 = vector.extract_strided_slice %6 {offsets = [0, 512], sizes = [1, 256], strides = [1, 1]} : vector<2x768xf32> to vector<1x256xf32>
    %14 = vector.extract_strided_slice %10 {offsets = [0, 0], sizes = [3, 256], strides = [1, 1]} : vector<16x256xf32> to vector<3x256xf32>
    %15 = vector.broadcast %11 : vector<1x256xf32> to vector<3x256xf32>
    %16 = arith.mulf %14, %15 : vector<3x256xf32>
    %17 = vector.extract_strided_slice %10 {offsets = [4, 0], sizes = [3, 256], strides = [1, 1]} : vector<16x256xf32> to vector<3x256xf32>
    %18 = vector.broadcast %12 : vector<1x256xf32> to vector<3x256xf32>
    %19 = arith.mulf %17, %18 : vector<3x256xf32>
    %20 = arith.addf %16, %19 : vector<3x256xf32>
    %21 = vector.extract_strided_slice %10 {offsets = [8, 0], sizes = [3, 256], strides = [1, 1]} : vector<16x256xf32> to vector<3x256xf32>
    %22 = vector.broadcast %13 : vector<1x256xf32> to vector<3x256xf32>
    %23 = arith.mulf %21, %22 : vector<3x256xf32>
    %24 = arith.addf %20, %23 : vector<3x256xf32>
    %25 = vector.extract_strided_slice %10 {offsets = [12, 0], sizes = [3, 256], strides = [1, 1]} : vector<16x256xf32> to vector<3x256xf32>
    %26 = arith.addf %24, %25 : vector<3x256xf32>
    %c0_10 = arith.constant 0 : index
    %c0_11 = arith.constant 0 : index
    %c0_12 = arith.constant 0 : index
    %27 = vector.load %arg6[%c0_10, %c0_11, %c0_12] : memref<2x3x256xf32, #tpu.memory_space<vmem>>, vector<1x3x256xf32>
    %28 = vector.shape_cast %27 : vector<1x3x256xf32> to vector<3x256xf32>
    %29 = vector.shape_cast %26 : vector<3x256xf32> to vector<1x3x256xf32>
    tpu.vector_store %arg6[%c0_10, %c0_11, %c0_12], %29 {strides = array<i32>} : memref<2x3x256xf32, #tpu.memory_space<vmem>>, vector<1x3x256xf32>,
    %30 = vector.extract_strided_slice %9 {offsets = [16, 0], sizes = [16, 256], strides = [1, 1]} : vector<32x256xf32> to vector<16x256xf32>
    %31 = vector.extract_strided_slice %6 {offsets = [1, 0], sizes = [1, 256], strides = [1, 1]} : vector<2x768xf32> to vector<1x256xf32>
    %32 = vector.extract_strided_slice %6 {offsets = [1, 256], sizes = [1, 256], strides = [1, 1]} : vector<2x768xf32> to vector<1x256xf32>
    %33 = vector.extract_strided_slice %6 {offsets = [1, 512], sizes = [1, 256], strides = [1, 1]} : vector<2x768xf32> to vector<1x256xf32>
    %34 = vector.extract_strided_slice %30 {offsets = [0, 0], sizes = [3, 256], strides = [1, 1]} : vector<16x256xf32> to vector<3x256xf32>
    %35 = vector.broadcast %31 : vector<1x256xf32> to vector<3x256xf32>
    %36 = arith.mulf %34, %35 : vector<3x256xf32>
    %37 = vector.extract_strided_slice %30 {offsets = [4, 0], sizes = [3, 256], strides = [1, 1]} : vector<16x256xf32> to vector<3x256xf32>
    %38 = vector.broadcast %32 : vector<1x256xf32> to vector<3x256xf32>
    %39 = arith.mulf %37, %38 : vector<3x256xf32>
    %40 = arith.addf %36, %39 : vector<3x256xf32>
    %41 = vector.extract_strided_slice %30 {offsets = [8, 0], sizes = [3, 256], strides = [1, 1]} : vector<16x256xf32> to vector<3x256xf32>
    %42 = vector.broadcast %33 : vector<1x256xf32> to vector<3x256xf32>
    %43 = arith.mulf %41, %42 : vector<3x256xf32>
    %44 = arith.addf %40, %43 : vector<3x256xf32>
    %45 = vector.extract_strided_slice %30 {offsets = [12, 0], sizes = [3, 256], strides = [1, 1]} : vector<16x256xf32> to vector<3x256xf32>
    %46 = arith.addf %44, %45 : vector<3x256xf32>
    %c1 = arith.constant 1 : index
    %c0_13 = arith.constant 0 : index
    %c0_14 = arith.constant 0 : index
    %47 = vector.load %arg6[%c1, %c0_13, %c0_14] : memref<2x3x256xf32, #tpu.memory_space<vmem>>, vector<1x3x256xf32>
    %48 = vector.shape_cast %47 : vector<1x3x256xf32> to vector<3x256xf32>
    %49 = vector.shape_cast %46 : vector<3x256xf32> to vector<1x3x256xf32>
    tpu.vector_store %arg6[%c1, %c0_13, %c0_14], %49 {strides = array<i32>} : memref<2x3x256xf32, #tpu.memory_space<vmem>>, vector<1x3x256xf32>,
    return
  }
  func.func @transform_0(%arg0: i32) -> (i32, i32) {
    %c0_i32 = arith.constant 0 : i32
    %c0_i32_0 = arith.constant 0 : i32
    %c0_i32_1 = arith.constant 0 : i32
    return %c0_i32, %c0_i32_0 : i32, i32
  }
  func.func @transform_1(%arg0: i32) -> (i32, i32) {
    %c0_i32 = arith.constant 0 : i32
    %c0_i32_0 = arith.constant 0 : i32
    %c0_i32_1 = arith.constant 0 : i32
    return %c0_i32, %c0_i32_0 : i32, i32
  }
  func.func @transform_2(%arg0: i32) -> (i32, i32) {
    %c0_i32 = arith.constant 0 : i32
    %c0_i32_0 = arith.constant 0 : i32
    %c0_i32_1 = arith.constant 0 : i32
    return %c0_i32, %c0_i32_0 : i32, i32
  }
  func.func @transform_3(%arg0: i32) -> (i32, i32) {
    %c0_i32 = arith.constant 0 : i32
    %c0_i32_0 = arith.constant 0 : i32
    %c0_i32_1 = arith.constant 0 : i32
    return %c0_i32, %c0_i32_0 : i32, i32
  }
  func.func @transform_4(%arg0: i32) -> (i32, i32) {
    %c0_i32 = arith.constant 0 : i32
    %c0_i32_0 = arith.constant 0 : i32
    %c0_i32_1 = arith.constant 0 : i32
    return %c0_i32, %c0_i32_0 : i32, i32
  }
  func.func @transform_5(%arg0: i32) -> (i32, i32, i32) {
    %c0_i32 = arith.constant 0 : i32
    %c0_i32_0 = arith.constant 0 : i32
    %c0_i32_1 = arith.constant 0 : i32
    %c0_i32_2 = arith.constant 0 : i32
    return %c0_i32, %c0_i32_0, %c0_i32_1 : i32, i32, i32
  }
}

</mosaic_0001>

<bundles_post_ra>
// kernel: tetra_smpl_forward.1
= control target key start
LH: loop header
LB: loop body
LE: loop exit
PB: predicated region body
PF: predicated region fallthrough
CT: control target
= control target key end

     0   :  { %v599_v36 = vlaneseq  ;;  %v2192_v37 = vmov 1983009808   ;;  %vm1087_vm0 = vcmask 195584   ;;  %s2888_s1 = inlined_call_operand.vmem [shape: bf16[512,768], index: 1, kind: input, shape index: {}]   ;;  %s2889_s0 = inlined_call_operand.vmem [shape: f32[2,512], index: 0, kind: input, shape index: {}]   ;;  %s2890_s3 = inlined_call_operand.vmem [shape: f32[24,256], index: 3, kind: input, shape index: {}]   ;;  %s2891_s4 = inlined_call_operand.vmem [shape: f32[32,24], index: 4, kind: input, shape index: {}]   ;;  %s2892_s2 = inlined_call_operand.vmem [shape: f32[1,768], index: 2, kind: input, shape index: {}]   ;;  %s2893_s5 = inlined_call_operand.vmem [shape: f32[2,3,256], index: 5, kind: output, shape index: {}]  }
   0x1   :  { %v1903_v0 = vld [vmem:[%s2888_s1 + $0x4] ss:$24 sps:$4 sm:$0xff]   ;;  %v1907_v2 = vld [vmem:[%s2888_s1] ss:$24 sps:$4 sm:$0xff]   ;;  %v1909_v4 = vld [vmem:[%s2888_s1 + $0x34] ss:$24 sps:$4 sm:$0xff]   ;;  %v632_v38 = vunpack.c.l.s4 %v2192_v37 }
   0x2   :  { %v1905_v1 = vld [vmem:[%s2888_s1 + $0x304] ss:$24 sps:$4 sm:$0xff]   ;;  %1306 = vmatprep.subr.bf16.mxu1 %v1903_v0  ;;  %v1908_v3 = vld [vmem:[%s2888_s1 + $0x300] ss:$24 sps:$4 sm:$0xff]   ;;  %v1911_v5 = vld [vmem:[%s2888_s1 + $0x334] ss:$24 sps:$4 sm:$0xff]  }
   0x3   :  { %1370 = vmatprep.subr.bf16.mxu0 %v1905_v1  ;;  %1308 = vmatpush1.bf16.msra.mxu1 %v1907_v2  ;;  %v1913_v6 = vld [vmem:[%s2888_s1 + $0x30] ss:$24 sps:$4 sm:$0xff]   ;;  %v1915_v8 = vld [vmem:[%s2888_s1 + $0x64] ss:$24 sps:$4 sm:$0xff]   ;;  %v1919_v10 = vld [vmem:[%s2888_s1 + $0x60] ss:$24 sps:$4 sm:$0xff]   ;;  %v633_v43 = vunpack.c.0.s8 %v632_v38 }
   0x4   :  { %1372 = vmatpush1.bf16.msra.mxu0 %v1908_v3  ;;  %1310 = vmatprep.subr.bf16.mxu1 %v1909_v4  ;;  %v1914_v7 = vld [vmem:[%s2888_s1 + $0x330] ss:$24 sps:$4 sm:$0xff]   ;;  %v1917_v9 = vld [vmem:[%s2888_s1 + $0x364] ss:$24 sps:$4 sm:$0xff]   ;;  %v1920_v11 = vld [vmem:[%s2888_s1 + $0x360] ss:$24 sps:$4 sm:$0xff]  }
   0x5   :  { %1374 = vmatprep.subr.bf16.mxu0 %v1911_v5  ;;  %v1921_v12 = vld [vmem:[%s2888_s1 + $0x94] ss:$24 sps:$4 sm:$0xff]   ;;  %v1925_v14 = vld [vmem:[%s2888_s1 + $0x90] ss:$24 sps:$4 sm:$0xff]   ;;  %v1927_v16 = vld [vmem:[%s2888_s1 + $0xc4] ss:$24 sps:$4 sm:$0xff]  }
   0x6   :  { %v1923_v13 = vld [vmem:[%s2888_s1 + $0x394] ss:$24 sps:$4 sm:$0xff]   ;;  %v1926_v15 = vld [vmem:[%s2888_s1 + $0x390] ss:$24 sps:$4 sm:$0xff]   ;;  %v1929_v17 = vld [vmem:[%s2888_s1 + $0x3c4] ss:$24 sps:$4 sm:$0xff]  }
   0x7   :  { %1312 = vmatpush1.bf16.msra.mxu1 %v1913_v6  ;;  %v1931_v18 = vld [vmem:[%s2888_s1 + $0xc0] ss:$24 sps:$4 sm:$0xff]   ;;  %v1933_v20 = vld [vmem:[%s2888_s1 + $0xf4] ss:$24 sps:$4 sm:$0xff]   ;;  %v1937_v22 = vld [vmem:[%s2888_s1 + $0xf0] ss:$24 sps:$4 sm:$0xff]  }
   0x8   :  { %1376 = vmatpush1.bf16.msra.mxu0 %v1914_v7  ;;  %1314 = vmatprep.subr.bf16.mxu1 %v1915_v8  ;;  %v1932_v19 = vld [vmem:[%s2888_s1 + $0x3c0] ss:$24 sps:$4 sm:$0xff]   ;;  %v1935_v21 = vld [vmem:[%s2888_s1 + $0x3f4] ss:$24 sps:$4 sm:$0xff]   ;;  %v1938_v23 = vld [vmem:[%s2888_s1 + $0x3f0] ss:$24 sps:$4 sm:$0xff]  }
   0x9   :  { %1378 = vmatprep.subr.bf16.mxu0 %v1917_v9  ;;  %v1939_v24 = vld [vmem:[%s2888_s1 + $0x124] ss:$24 sps:$4 sm:$0xff]   ;;  %v1943_v26 = vld [vmem:[%s2888_s1 + $0x120] ss:$24 sps:$4 sm:$0xff]   ;;  %v1945_v28 = vld [vmem:[%s2888_s1 + $0x154] ss:$24 sps:$4 sm:$0xff]  }
   0xa   :  { %v1941_v25 = vld [vmem:[%s2888_s1 + $0x424] ss:$24 sps:$4 sm:$0xff]   ;;  %v1944_v27 = vld [vmem:[%s2888_s1 + $0x420] ss:$24 sps:$4 sm:$0xff]   ;;  %v1947_v29 = vld [vmem:[%s2888_s1 + $0x454] ss:$24 sps:$4 sm:$0xff]  }
   0xb   :  { %1316 = vmatpush1.bf16.msra.mxu1 %v1919_v10  ;;  %v1949_v30 = vld [vmem:[%s2888_s1 + $0x150] ss:$24 sps:$4 sm:$0xff]   ;;  %v1951_v32 = vld [vmem:[%s2888_s1 + $0x184] ss:$24 sps:$4 sm:$0xff]   ;;  %v1955_v34 = vld [vmem:[%s2888_s1 + $0x180] ss:$24 sps:$4 sm:$0xff]  }
   0xc   :  { %1380 = vmatpush1.bf16.msra.mxu0 %v1920_v11  ;;  %1318 = vmatprep.subr.bf16.mxu1 %v1921_v12  ;;  %v1950_v31 = vld [vmem:[%s2888_s1 + $0x450] ss:$24 sps:$4 sm:$0xff]   ;;  %v1953_v33 = vld [vmem:[%s2888_s1 + $0x484] ss:$24 sps:$4 sm:$0xff]   ;;  %v1956_v35 = vld [vmem:[%s2888_s1 + $0x480] ss:$24 sps:$4 sm:$0xff]  }
   0xd   :  { %1382 = vmatprep.subr.bf16.mxu0 %v1923_v13  ;;  %v1957_v39 = vld [vmem:[%s2888_s1 + $0x1b4] ss:$24 sps:$4 sm:$0xff]   ;;  %v1961_v41 = vld [vmem:[%s2888_s1 + $0x1b0] ss:$24 sps:$4 sm:$0xff]   ;;  %v2341_v42 = vshrl.u32 %v599_v36, 7  ;;  %v20_v52 = vld [vmem:[%s2889_s0] sm:$0xff] }
   0xe   :  { %v1959_v40 = vld [vmem:[%s2888_s1 + $0x4b4] ss:$24 sps:$4 sm:$0xff]   ;;  %v1962_v44 = vld [vmem:[%s2888_s1 + $0x4b0] ss:$24 sps:$4 sm:$0xff]   ;;  %v1963_v45 = vld [vmem:[%s2888_s1 + $0x1e4] ss:$24 sps:$4 sm:$0xff]   ;;  %v630_v55 = vcombine.high %v20_v52, %v20_v52 }
   0xf   :  { %1320 = vmatpush1.bf16.msra.mxu1 %v1925_v14  ;;  %v1965_v46 = vld [vmem:[%s2888_s1 + $0x4e4] ss:$24 sps:$4 sm:$0xff]   ;;  %v1967_v47 = vld [vmem:[%s2888_s1 + $0x1e0] ss:$24 sps:$4 sm:$0xff]   ;;  %v636_v49 = vsub.s32 %v633_v43, %v2341_v42  ;;  %v1969_v50 = vld [vmem:[%s2888_s1 + $0x214] ss:$24 sps:$4 sm:$0xff]  }
  0x10   :  { %1384 = vmatpush1.bf16.msra.mxu0 %v1926_v15  ;;  %1322 = vmatprep.subr.bf16.mxu1 %v1927_v16  ;;  %v1968_v48 = vld [vmem:[%s2888_s1 + $0x4e0] ss:$24 sps:$4 sm:$0xff]   ;;  %v1971_v51 = vld [vmem:[%s2888_s1 + $0x514] ss:$24 sps:$4 sm:$0xff]   ;;  %v1973_v53 = vld [vmem:[%s2888_s1 + $0x210] ss:$24 sps:$4 sm:$0xff]  }
  0x11   :  { %1386 = vmatprep.subr.bf16.mxu0 %v1929_v17  ;;  %v2371_v54 = vrot.slane %v20_v52, %v636_v49  ;;  %v1974_v56 = vld [vmem:[%s2888_s1 + $0x510] ss:$24 sps:$4 sm:$0xff]   ;;  %v1975_v57 = vld [vmem:[%s2888_s1 + $0x244] ss:$24 sps:$4 sm:$0xff]   ;;  %v2384_v60 = vrot.slane %v630_v55, %v636_v49  ;;  %v1979_v61 = vld [vmem:[%s2888_s1 + $0x240] ss:$24 sps:$4 sm:$0xff]  }
  0x12   :  { %v1977_v58 = vld [vmem:[%s2888_s1 + $0x544] ss:$24 sps:$4 sm:$0xff]   ;;  %v1980_v63 = vld [vmem:[%s2888_s1 + $0x540] ss:$24 sps:$4 sm:$0xff]   ;;  %v1981_v0 = vld [vmem:[%s2888_s1 + $0x274] ss:$24 sps:$4 sm:$0xff]  }
  0x13   :  { %1324 = vmatpush1.bf16.msra.mxu1 %v1931_v18  ;;  %v645_v59 = vcombine.high %v2371_v54, %v2371_v54  ;;  %v2391_v62 = vcombine.high %v2384_v60, %v2384_v60  ;;  %v1983_v1 = vld [vmem:[%s2888_s1 + $0x574] ss:$24 sps:$4 sm:$0xff]   ;;  %v1985_v2 = vld [vmem:[%s2888_s1 + $0x270] ss:$24 sps:$4 sm:$0xff]   ;;  %v1987_v4 = vld [vmem:[%s2888_s1 + $0x2a4] ss:$24 sps:$4 sm:$0xff]  }
  0x14   :  { %1388 = vmatpush1.bf16.msra.mxu0 %v1932_v19  ;;  %1326 = vmatprep.subr.bf16.mxu1 %v1933_v20  ;;  %v1986_v3 = vld [vmem:[%s2888_s1 + $0x570] ss:$24 sps:$4 sm:$0xff]   ;;  %v1989_v5 = vld [vmem:[%s2888_s1 + $0x5a4] ss:$24 sps:$4 sm:$0xff]   ;;  %v1991_v6 = vld [vmem:[%s2888_s1 + $0x2a0] ss:$24 sps:$4 sm:$0xff]  }
  0x15   :  { %1390 = vmatprep.subr.bf16.mxu0 %v1935_v21  ;;  %715 = vmatprep.mubr.f32.mxu1 %v645_v59  ;;  %v1992_v7 = vld [vmem:[%s2888_s1 + $0x5a0] ss:$24 sps:$4 sm:$0xff]   ;;  %v1993_v8 = vld [vmem:[%s2888_s1 + $0x2d4] ss:$24 sps:$4 sm:$0xff]   ;;  %v1997_v10 = vld [vmem:[%s2888_s1 + $0x2d0] ss:$24 sps:$4 sm:$0xff]  }
  0x16   :  { %786 = vmatprep.mubr.f32.mxu0 %v2391_v62  ;;  %v1995_v9 = vld [vmem:[%s2888_s1 + $0x5d4] ss:$24 sps:$4 sm:$0xff]   ;;  %v1998_v11 = vld [vmem:[%s2888_s1 + $0x5d0] ss:$24 sps:$4 sm:$0xff]   ;;  %v2009_v17 = vld [vmem:[%s2888_s1 + $0x44] ss:$24 sps:$4 sm:$0xff]  }
  0x17   :  { %1328 = vmatpush1.bf16.msra.mxu1 %v1937_v22  ;;  %v2000_v12 = vld [vmem:[%s2888_s1 + $0xc] ss:$24 sps:$4 sm:$0xff]   ;;  %v2002_v14 = vld [vmem:[%s2888_s1 + $0x8] ss:$24 sps:$4 sm:$0xff]   ;;  %v2006_v16 = vld [vmem:[%s2888_s1 + $0x3c] ss:$24 sps:$4 sm:$0xff]  }
  0x18   :  { %1392 = vmatpush1.bf16.msra.mxu0 %v1938_v23  ;;  %1330 = vmatprep.subr.bf16.mxu1 %v1939_v24  ;;  %v2003_v13 = vld [vmem:[%s2888_s1 + $0x14] ss:$24 sps:$4 sm:$0xff]   ;;  %v2005_v15 = vld [vmem:[%s2888_s1 + $0x10] ss:$24 sps:$4 sm:$0xff]   ;;  %v2011_v19 = vld [vmem:[%s2888_s1 + $0x40] ss:$24 sps:$4 sm:$0xff]  }
  0x19   :  { %1394 = vmatprep.subr.bf16.mxu0 %v1941_v25  ;;  %v2008_v18 = vld [vmem:[%s2888_s1 + $0x38] ss:$24 sps:$4 sm:$0xff]   ;;  %v2012_v20 = vld [vmem:[%s2888_s1 + $0x6c] ss:$24 sps:$4 sm:$0xff]   ;;  %v2014_v22 = vld [vmem:[%s2888_s1 + $0x68] ss:$24 sps:$4 sm:$0xff]  }
  0x1a   :  { %v2015_v21 = vld [vmem:[%s2888_s1 + $0x74] ss:$24 sps:$4 sm:$0xff]   ;;  %v2017_v23 = vld [vmem:[%s2888_s1 + $0x70] ss:$24 sps:$4 sm:$0xff]   ;;  %v2021_v25 = vld [vmem:[%s2888_s1 + $0xa4] ss:$24 sps:$4 sm:$0xff]  }
  0x1b   :  { %1332 = vmatpush1.bf16.msra.mxu1 %v1943_v26  ;;  %v2018_v24 = vld [vmem:[%s2888_s1 + $0x9c] ss:$24 sps:$4 sm:$0xff]   ;;  %v2020_v26 = vld [vmem:[%s2888_s1 + $0x98] ss:$24 sps:$4 sm:$0xff]   ;;  %v2036_v36 = vld [vmem:[%s2888_s1 + $0x12c] ss:$24 sps:$4 sm:$0xff]  }
  0x1c   :  { %1396 = vmatpush1.bf16.msra.mxu0 %v1944_v27  ;;  %1334 = vmatprep.subr.bf16.mxu1 %v1945_v28  ;;  %v2023_v27 = vld [vmem:[%s2888_s1 + $0xa0] ss:$24 sps:$4 sm:$0xff]   ;;  %v2024_v28 = vld [vmem:[%s2888_s1 + $0xcc] ss:$24 sps:$4 sm:$0xff]   ;;  %v2054_v49 = vld [vmem:[%s2888_s1 + $0x1bc] ss:$24 sps:$4 sm:$0xff]  }
  0x1d   :  { %1398 = vmatprep.subr.bf16.mxu0 %v1947_v29  ;;  %v2027_v29 = vld [vmem:[%s2888_s1 + $0xd4] ss:$24 sps:$4 sm:$0xff]   ;;  %v2038_v38 = vld [vmem:[%s2888_s1 + $0x128] ss:$24 sps:$4 sm:$0xff]   ;;  %v2044_v43 = vld [vmem:[%s2888_s1 + $0x158] ss:$24 sps:$4 sm:$0xff]  }
  0x1e   :  { %v2039_v37 = vld [vmem:[%s2888_s1 + $0x134] ss:$24 sps:$4 sm:$0xff]   ;;  %v2059_v52 = vld [vmem:[%s2888_s1 + $0x1c0] ss:$24 sps:$4 sm:$0xff]  }
  0x1f   :  { %1336 = vmatpush1.bf16.msra.mxu1 %v1949_v30  ;;  %v2026_v30 = vld [vmem:[%s2888_s1 + $0xc8] ss:$24 sps:$4 sm:$0xff]   ;;  %v2063_v55 = vld [vmem:[%s2888_s1 + $0x1f4] ss:$24 sps:$4 sm:$0xff]  }
  0x20   :  { %1400 = vmatpush1.bf16.msra.mxu0 %v1950_v31  ;;  %1338 = vmatprep.subr.bf16.mxu1 %v1951_v32  ;;  %v2029_v31 = vld [vmem:[%s2888_s1 + $0xd0] ss:$24 sps:$4 sm:$0xff]   ;;  %v2030_v32 = vld [vmem:[%s2888_s1 + $0xfc] ss:$24 sps:$4 sm:$0xff]  }
  0x21   :  { %1402 = vmatprep.subr.bf16.mxu0 %v1953_v33  ;;  %v2033_v33 = vld [vmem:[%s2888_s1 + $0x104] ss:$24 sps:$4 sm:$0xff]  }
  0x23   :  { %1340 = vmatpush1.bf16.msra.mxu1 %v1955_v34  ;;  %v2032_v34 = vld [vmem:[%s2888_s1 + $0xf8] ss:$24 sps:$4 sm:$0xff]  }
  0x24   :  { %1404 = vmatpush1.bf16.msra.mxu0 %v1956_v35  ;;  %1342 = vmatprep.subr.bf16.mxu1 %v1957_v39  ;;  %v2035_v35 = vld [vmem:[%s2888_s1 + $0x100] ss:$24 sps:$4 sm:$0xff]   ;;  %v2041_v39 = vld [vmem:[%s2888_s1 + $0x130] ss:$24 sps:$4 sm:$0xff]  }
  0x25   :  { %1406 = vmatprep.subr.bf16.mxu0 %v1959_v40  ;;  %v2042_v40 = vld [vmem:[%s2888_s1 + $0x15c] ss:$24 sps:$4 sm:$0xff]  }
  0x27   :  { %1344 = vmatpush1.bf16.msra.mxu1 %v1961_v41  ;;  %v2045_v41 = vld [vmem:[%s2888_s1 + $0x164] ss:$24 sps:$4 sm:$0xff]  }
  0x28   :  { %1408 = vmatpush1.bf16.msra.mxu0 %v1962_v44  ;;  %1346 = vmatprep.subr.bf16.mxu1 %v1963_v45  ;;  %v2047_v44 = vld [vmem:[%s2888_s1 + $0x160] ss:$24 sps:$4 sm:$0xff]   ;;  %v2048_v45 = vld [vmem:[%s2888_s1 + $0x18c] ss:$24 sps:$4 sm:$0xff]  }
  0x29   :  { %1410 = vmatprep.subr.bf16.mxu0 %v1965_v46  ;;  %v2051_v46 = vld [vmem:[%s2888_s1 + $0x194] ss:$24 sps:$4 sm:$0xff]  }
  0x2b   :  { %1348 = vmatpush1.bf16.msra.mxu1 %v1967_v47  ;;  %v2050_v47 = vld [vmem:[%s2888_s1 + $0x188] ss:$24 sps:$4 sm:$0xff]  }
  0x2c   :  { %1412 = vmatpush1.bf16.msra.mxu0 %v1968_v48  ;;  %1350 = vmatprep.subr.bf16.mxu1 %v1969_v50  ;;  %v2053_v48 = vld [vmem:[%s2888_s1 + $0x190] ss:$24 sps:$4 sm:$0xff]   ;;  %v2057_v50 = vld [vmem:[%s2888_s1 + $0x1c4] ss:$24 sps:$4 sm:$0xff]  }
  0x2d   :  { %1414 = vmatprep.subr.bf16.mxu0 %v1971_v51  ;;  %v2056_v51 = vld [vmem:[%s2888_s1 + $0x1b8] ss:$24 sps:$4 sm:$0xff]  }
  0x2f   :  { %1352 = vmatpush1.bf16.msra.mxu1 %v1973_v53  ;;  %v2060_v53 = vld [vmem:[%s2888_s1 + $0x1ec] ss:$24 sps:$4 sm:$0xff]  }
  0x30   :  { %1416 = vmatpush1.bf16.msra.mxu0 %v1974_v56  ;;  %1354 = vmatprep.subr.bf16.mxu1 %v1975_v57  ;;  %v2062_v56 = vld [vmem:[%s2888_s1 + $0x1e8] ss:$24 sps:$4 sm:$0xff]  }
  0x31   :  { %1418 = vmatprep.subr.bf16.mxu0 %v1977_v58  ;;  %v2065_v57 = vld [vmem:[%s2888_s1 + $0x1f0] ss:$24 sps:$4 sm:$0xff]   ;;  %v2066_v58 = vld [vmem:[%s2888_s1 + $0x21c] ss:$24 sps:$4 sm:$0xff]  }
  0x33   :  { %1356 = vmatpush1.bf16.msra.mxu1 %v1979_v61  ;;  %v2068_v61 = vld [vmem:[%s2888_s1 + $0x218] ss:$24 sps:$4 sm:$0xff]  }
  0x34   :  { %1420 = vmatpush1.bf16.msra.mxu0 %v1980_v63  ;;  %1358 = vmatprep.subr.bf16.mxu1 %v1981_v0  ;;  %v2071_v63 = vld [vmem:[%s2888_s1 + $0x220] ss:$24 sps:$4 sm:$0xff]   ;;  %v2072_v0 = vld [vmem:[%s2888_s1 + $0x24c] ss:$24 sps:$4 sm:$0xff]  }
  0x35   :  { %1422 = vmatprep.subr.bf16.mxu0 %v1983_v1  ;;  %v2075_v1 = vld [vmem:[%s2888_s1 + $0x254] ss:$24 sps:$4 sm:$0xff]  }
  0x37   :  { %1360 = vmatpush1.bf16.msra.mxu1 %v1985_v2  ;;  %v2074_v2 = vld [vmem:[%s2888_s1 + $0x248] ss:$24 sps:$4 sm:$0xff]  }
  0x38   :  { %1424 = vmatpush1.bf16.msra.mxu0 %v1986_v3  ;;  %1362 = vmatprep.subr.bf16.mxu1 %v1987_v4  ;;  %v2077_v3 = vld [vmem:[%s2888_s1 + $0x250] ss:$24 sps:$4 sm:$0xff]   ;;  %v2078_v4 = vld [vmem:[%s2888_s1 + $0x27c] ss:$24 sps:$4 sm:$0xff]  }
  0x39   :  { %1426 = vmatprep.subr.bf16.mxu0 %v1989_v5  ;;  %v2081_v5 = vld [vmem:[%s2888_s1 + $0x284] ss:$24 sps:$4 sm:$0xff]  }
  0x3b   :  { %1364 = vmatpush1.bf16.msra.mxu1 %v1991_v6  ;;  %v2080_v6 = vld [vmem:[%s2888_s1 + $0x278] ss:$24 sps:$4 sm:$0xff]  }
  0x3c   :  { %1428 = vmatpush1.bf16.msra.mxu0 %v1992_v7  ;;  %1366 = vmatprep.subr.bf16.mxu1 %v1993_v8  ;;  %v2083_v7 = vld [vmem:[%s2888_s1 + $0x280] ss:$24 sps:$4 sm:$0xff]   ;;  %v2084_v8 = vld [vmem:[%s2888_s1 + $0x2ac] ss:$24 sps:$4 sm:$0xff]  }
  0x3d   :  { %1430 = vmatprep.subr.bf16.mxu0 %v1995_v9  ;;  %v2087_v9 = vld [vmem:[%s2888_s1 + $0x2b4] ss:$24 sps:$4 sm:$0xff]  }
  0x3f   :  { %1368 = vmatpush1.bf16.msra.mxu1 %v1997_v10  ;;  %v2086_v10 = vld [vmem:[%s2888_s1 + $0x2a8] ss:$24 sps:$4 sm:$0xff]  }
  0x40   :  { %1432 = vmatpush1.bf16.msra.mxu0 %v1998_v11  ;;  %1434 = vmatprep.subr.bf16.mxu1 %v2000_v12  ;;  %v2089_v11 = vld [vmem:[%s2888_s1 + $0x2b0] ss:$24 sps:$4 sm:$0xff]   ;;  %v2090_v12 = vld [vmem:[%s2888_s1 + $0x2dc] ss:$24 sps:$4 sm:$0xff]  }
  0x41   :  { %1562 = vmatprep.subr.bf16.mxu0 %v2003_v13  ;;  %v2093_v13 = vld [vmem:[%s2888_s1 + $0x2e4] ss:$24 sps:$4 sm:$0xff]  }
  0x42   :  { %716 = vmatmul.mubr.f32.vlgmr.msra.gmra.mrb[0].mxu1 %v2371_v54 }
  0x43   :  { %787 = vmatmul.mubr.f32.vlgmr.msra.gmra.mrb[0].mxu0 %v2384_v60  ;;  %1436 = vmatpush1.bf16.msra.mxu1 %v2002_v14  ;;  %v2092_v14 = vld [vmem:[%s2888_s1 + $0x2d8] ss:$24 sps:$4 sm:$0xff]  }
  0x44   :  { %1564 = vmatpush1.bf16.msra.mxu0 %v2005_v15  ;;  %1438 = vmatprep.subr.bf16.mxu1 %v2006_v16  ;;  %v2095_v15 = vld [vmem:[%s2888_s1 + $0x2e0] ss:$24 sps:$4 sm:$0xff]   ;;  %v2096_v16 = vld [vmem:[%s2888_s1 + $0x30c] ss:$24 sps:$4 sm:$0xff]  }
  0x45   :  { %1566 = vmatprep.subr.bf16.mxu0 %v2009_v17  ;;  %857 = vmatprep.mubr.f32.mxu1 %v645_v59  ;;  %v2099_v17 = vld [vmem:[%s2888_s1 + $0x314] ss:$24 sps:$4 sm:$0xff]  }
  0x46   :  { %999 = vmatprep.mubr.f32.mxu0 %v645_v59  ;;  %v2069_v59 = vld [vmem:[%s2888_s1 + $0x224] ss:$24 sps:$4 sm:$0xff]  }
  0x47   :  { %1440 = vmatpush1.bf16.msra.mxu1 %v2008_v18  ;;  %v2098_v18 = vld [vmem:[%s2888_s1 + $0x308] ss:$24 sps:$4 sm:$0xff]  }
  0x48   :  { %1568 = vmatpush1.bf16.msra.mxu0 %v2011_v19  ;;  %1442 = vmatprep.subr.bf16.mxu1 %v2012_v20  ;;  %v2101_v19 = vld [vmem:[%s2888_s1 + $0x310] ss:$24 sps:$4 sm:$0xff]   ;;  %v2102_v20 = vld [vmem:[%s2888_s1 + $0x33c] ss:$24 sps:$4 sm:$0xff]  }
  0x49   :  { %1570 = vmatprep.subr.bf16.mxu0 %v2015_v21  ;;  %v2105_v21 = vld [vmem:[%s2888_s1 + $0x344] ss:$24 sps:$4 sm:$0xff]  }
  0x4b   :  { %1444 = vmatpush1.bf16.msra.mxu1 %v2014_v22  ;;  %v2104_v22 = vld [vmem:[%s2888_s1 + $0x338] ss:$24 sps:$4 sm:$0xff]  }
  0x4c   :  { %1572 = vmatpush1.bf16.msra.mxu0 %v2017_v23  ;;  %1446 = vmatprep.subr.bf16.mxu1 %v2018_v24  ;;  %v2107_v23 = vld [vmem:[%s2888_s1 + $0x340] ss:$24 sps:$4 sm:$0xff]   ;;  %v2108_v24 = vld [vmem:[%s2888_s1 + $0x36c] ss:$24 sps:$4 sm:$0xff]  }
  0x4d   :  { %1574 = vmatprep.subr.bf16.mxu0 %v2021_v25  ;;  %v2110_v25 = vld [vmem:[%s2888_s1 + $0x368] ss:$24 sps:$4 sm:$0xff]  }
  0x4f   :  { %1448 = vmatpush1.bf16.msra.mxu1 %v2020_v26  ;;  %v2113_v26 = vld [vmem:[%s2888_s1 + $0x370] ss:$24 sps:$4 sm:$0xff]  }
  0x50   :  { %1576 = vmatpush1.bf16.msra.mxu0 %v2023_v27  ;;  %1450 = vmatprep.subr.bf16.mxu1 %v2024_v28  ;;  %v2114_v27 = vld [vmem:[%s2888_s1 + $0x39c] ss:$24 sps:$4 sm:$0xff]   ;;  %v2116_v28 = vld [vmem:[%s2888_s1 + $0x398] ss:$24 sps:$4 sm:$0xff]  }
  0x51   :  { %1578 = vmatprep.subr.bf16.mxu0 %v2027_v29  ;;  %v2119_v29 = vld [vmem:[%s2888_s1 + $0x3a0] ss:$24 sps:$4 sm:$0xff]  }
  0x53   :  { %1452 = vmatpush1.bf16.msra.mxu1 %v2026_v30  ;;  %v2120_v30 = vld [vmem:[%s2888_s1 + $0x3cc] ss:$24 sps:$4 sm:$0xff]  }
  0x54   :  { %1580 = vmatpush1.bf16.msra.mxu0 %v2029_v31  ;;  %1454 = vmatprep.subr.bf16.mxu1 %v2030_v32  ;;  %v2123_v31 = vld [vmem:[%s2888_s1 + $0x3d4] ss:$24 sps:$4 sm:$0xff]   ;;  %v2122_v32 = vld [vmem:[%s2888_s1 + $0x3c8] ss:$24 sps:$4 sm:$0xff]  }
  0x55   :  { %1582 = vmatprep.subr.bf16.mxu0 %v2033_v33  ;;  %v2125_v33 = vld [vmem:[%s2888_s1 + $0x3d0] ss:$24 sps:$4 sm:$0xff]  }
  0x57   :  { %1456 = vmatpush1.bf16.msra.mxu1 %v2032_v34  ;;  %v2126_v34 = vld [vmem:[%s2888_s1 + $0x3fc] ss:$24 sps:$4 sm:$0xff]  }
  0x58   :  { %1584 = vmatpush1.bf16.msra.mxu0 %v2035_v35  ;;  %1458 = vmatprep.subr.bf16.mxu1 %v2036_v36  ;;  %v2129_v35 = vld [vmem:[%s2888_s1 + $0x404] ss:$24 sps:$4 sm:$0xff]   ;;  %v2128_v36 = vld [vmem:[%s2888_s1 + $0x3f8] ss:$24 sps:$4 sm:$0xff]  }
  0x59   :  { %1586 = vmatprep.subr.bf16.mxu0 %v2039_v37  ;;  %v2131_v37 = vld [vmem:[%s2888_s1 + $0x400] ss:$24 sps:$4 sm:$0xff]  }
  0x5b   :  { %1460 = vmatpush1.bf16.msra.mxu1 %v2038_v38  ;;  %v2132_v38 = vld [vmem:[%s2888_s1 + $0x42c] ss:$24 sps:$4 sm:$0xff]  }
  0x5c   :  { %1588 = vmatpush1.bf16.msra.mxu0 %v2041_v39  ;;  %1462 = vmatprep.subr.bf16.mxu1 %v2042_v40  ;;  %v2135_v39 = vld [vmem:[%s2888_s1 + $0x434] ss:$24 sps:$4 sm:$0xff]   ;;  %v2134_v40 = vld [vmem:[%s2888_s1 + $0x428] ss:$24 sps:$4 sm:$0xff]  }
  0x5d   :  { %1590 = vmatprep.subr.bf16.mxu0 %v2045_v41  ;;  %v2137_v41 = vld [vmem:[%s2888_s1 + $0x430] ss:$24 sps:$4 sm:$0xff]  }
  0x5f   :  { %1464 = vmatpush1.bf16.msra.mxu1 %v2044_v43  ;;  %v2138_v43 = vld [vmem:[%s2888_s1 + $0x45c] ss:$24 sps:$4 sm:$0xff]  }
  0x60   :  { %1592 = vmatpush1.bf16.msra.mxu0 %v2047_v44  ;;  %1466 = vmatprep.subr.bf16.mxu1 %v2048_v45  ;;  %v2141_v44 = vld [vmem:[%s2888_s1 + $0x464] ss:$24 sps:$4 sm:$0xff]   ;;  %v2140_v45 = vld [vmem:[%s2888_s1 + $0x458] ss:$24 sps:$4 sm:$0xff]  }
  0x61   :  { %1594 = vmatprep.subr.bf16.mxu0 %v2051_v46  ;;  %v2143_v46 = vld [vmem:[%s2888_s1 + $0x460] ss:$24 sps:$4 sm:$0xff]  }
  0x63   :  { %1468 = vmatpush1.bf16.msra.mxu1 %v2050_v47  ;;  %v2144_v47 = vld [vmem:[%s2888_s1 + $0x48c] ss:$24 sps:$4 sm:$0xff]  }
  0x64   :  { %1596 = vmatpush1.bf16.msra.mxu0 %v2053_v48  ;;  %1470 = vmatprep.subr.bf16.mxu1 %v2054_v49  ;;  %v2147_v48 = vld [vmem:[%s2888_s1 + $0x494] ss:$24 sps:$4 sm:$0xff]   ;;  %v2146_v49 = vld [vmem:[%s2888_s1 + $0x488] ss:$24 sps:$4 sm:$0xff]  }
  0x65   :  { %1598 = vmatprep.subr.bf16.mxu0 %v2057_v50  ;;  %v2149_v50 = vld [vmem:[%s2888_s1 + $0x490] ss:$24 sps:$4 sm:$0xff]  }
  0x67   :  { %1472 = vmatpush1.bf16.msra.mxu1 %v2056_v51  ;;  %v2150_v51 = vld [vmem:[%s2888_s1 + $0x4bc] ss:$24 sps:$4 sm:$0xff]  }
  0x68   :  { %1600 = vmatpush1.bf16.msra.mxu0 %v2059_v52  ;;  %1474 = vmatprep.subr.bf16.mxu1 %v2060_v53  ;;  %v2153_v52 = vld [vmem:[%s2888_s1 + $0x4c4] ss:$24 sps:$4 sm:$0xff]   ;;  %v2152_v53 = vld [vmem:[%s2888_s1 + $0x4b8] ss:$24 sps:$4 sm:$0xff]  }
  0x69   :  { %1602 = vmatprep.subr.bf16.mxu0 %v2063_v55  ;;  %v2155_v55 = vld [vmem:[%s2888_s1 + $0x4c0] ss:$24 sps:$4 sm:$0xff]  }
  0x6b   :  { %1476 = vmatpush1.bf16.msra.mxu1 %v2062_v56  ;;  %v2156_v56 = vld [vmem:[%s2888_s1 + $0x4ec] ss:$24 sps:$4 sm:$0xff]  }
  0x6c   :  { %1604 = vmatpush1.bf16.msra.mxu0 %v2065_v57  ;;  %1478 = vmatprep.subr.bf16.mxu1 %v2066_v58  ;;  %v2159_v57 = vld [vmem:[%s2888_s1 + $0x4f4] ss:$24 sps:$4 sm:$0xff]   ;;  %v2158_v58 = vld [vmem:[%s2888_s1 + $0x4e8] ss:$24 sps:$4 sm:$0xff]  }
  0x6d   :  { %1606 = vmatprep.subr.bf16.mxu0 %v2069_v59  ;;  %v2161_v59 = vld [vmem:[%s2888_s1 + $0x4f0] ss:$24 sps:$4 sm:$0xff]  }
  0x6f   :  { %1480 = vmatpush1.bf16.msra.mxu1 %v2068_v61  ;;  %v2162_v61 = vld [vmem:[%s2888_s1 + $0x51c] ss:$24 sps:$4 sm:$0xff]  }
  0x70   :  { %1608 = vmatpush1.bf16.msra.mxu0 %v2071_v63  ;;  %1482 = vmatprep.subr.bf16.mxu1 %v2072_v0  ;;  %v2165_v63 = vld [vmem:[%s2888_s1 + $0x524] ss:$24 sps:$4 sm:$0xff]   ;;  %v2164_v0 = vld [vmem:[%s2888_s1 + $0x518] ss:$24 sps:$4 sm:$0xff]  }
  0x71   :  { %1610 = vmatprep.subr.bf16.mxu0 %v2075_v1  ;;  %v2167_v1 = vld [vmem:[%s2888_s1 + $0x520] ss:$24 sps:$4 sm:$0xff]  }
  0x73   :  { %1484 = vmatpush1.bf16.msra.mxu1 %v2074_v2  ;;  %v2168_v2 = vld [vmem:[%s2888_s1 + $0x54c] ss:$24 sps:$4 sm:$0xff]  }
  0x74   :  { %1612 = vmatpush1.bf16.msra.mxu0 %v2077_v3  ;;  %1486 = vmatprep.subr.bf16.mxu1 %v2078_v4  ;;  %v2171_v3 = vld [vmem:[%s2888_s1 + $0x554] ss:$24 sps:$4 sm:$0xff]   ;;  %v2170_v4 = vld [vmem:[%s2888_s1 + $0x548] ss:$24 sps:$4 sm:$0xff]  }
  0x75   :  { %1614 = vmatprep.subr.bf16.mxu0 %v2081_v5  ;;  %v2173_v5 = vld [vmem:[%s2888_s1 + $0x550] ss:$24 sps:$4 sm:$0xff]  }
  0x77   :  { %1488 = vmatpush1.bf16.msra.mxu1 %v2080_v6  ;;  %v2174_v6 = vld [vmem:[%s2888_s1 + $0x57c] ss:$24 sps:$4 sm:$0xff]  }
  0x78   :  { %1616 = vmatpush1.bf16.msra.mxu0 %v2083_v7  ;;  %1490 = vmatprep.subr.bf16.mxu1 %v2084_v8  ;;  %v2177_v7 = vld [vmem:[%s2888_s1 + $0x584] ss:$24 sps:$4 sm:$0xff]   ;;  %v2176_v8 = vld [vmem:[%s2888_s1 + $0x578] ss:$24 sps:$4 sm:$0xff]  }
  0x79   :  { %1618 = vmatprep.subr.bf16.mxu0 %v2087_v9  ;;  %v2179_v9 = vld [vmem:[%s2888_s1 + $0x580] ss:$24 sps:$4 sm:$0xff]  }
  0x7b   :  { %1492 = vmatpush1.bf16.msra.mxu1 %v2086_v10  ;;  %v2180_v10 = vld [vmem:[%s2888_s1 + $0x5ac] ss:$24 sps:$4 sm:$0xff]  }
  0x7c   :  { %1620 = vmatpush1.bf16.msra.mxu0 %v2089_v11  ;;  %1494 = vmatprep.subr.bf16.mxu1 %v2090_v12  ;;  %v2183_v11 = vld [vmem:[%s2888_s1 + $0x5b4] ss:$24 sps:$4 sm:$0xff]   ;;  %v2182_v12 = vld [vmem:[%s2888_s1 + $0x5a8] ss:$24 sps:$4 sm:$0xff]  }
  0x7d   :  { %1622 = vmatprep.subr.bf16.mxu0 %v2093_v13  ;;  %v2185_v13 = vld [vmem:[%s2888_s1 + $0x5b0] ss:$24 sps:$4 sm:$0xff]  }
  0x7f   :  { %1496 = vmatpush1.bf16.msra.mxu1 %v2092_v14  ;;  %v2186_v14 = vld [vmem:[%s2888_s1 + $0x5dc] ss:$24 sps:$4 sm:$0xff]  }
  0x80   :  { %1624 = vmatpush1.bf16.msra.mxu0 %v2095_v15  ;;  %1498 = vmatprep.subr.bf16.mxu1 %v2096_v16  ;;  %v2189_v15 = vld [vmem:[%s2888_s1 + $0x5e4] ss:$24 sps:$4 sm:$0xff]   ;;  %v1082_v16 = vld [vmem:[%s2890_s3 + $0x8] sm:$0xff] }
  0x81   :  { %1626 = vmatprep.subr.bf16.mxu0 %v2099_v17  ;;  %v1084_v17 = vld [vmem:[%s2890_s3 + $0x18] sm:$0xff] }
  0x82   :  { %858 = vmatmul.mubr.f32.vlgmr.msra.gmra.mrb[2].mxu1 %v2371_v54 }
  0x83   :  { %1000 = vmatmul.mubr.f32.vlgmr.msra.gmra.mrb[2].mxu0 %v2371_v54  ;;  %1500 = vmatpush1.bf16.msra.mxu1 %v2098_v18  ;;  %v2111_v54 = vld [vmem:[%s2888_s1 + $0x374] ss:$24 sps:$4 sm:$0xff]   ;;  %v2188_v18 = vld [vmem:[%s2888_s1 + $0x5d8] ss:$24 sps:$4 sm:$0xff]  }
  0x84   :  { %1628 = vmatpush1.bf16.msra.mxu0 %v2101_v19  ;;  %1502 = vmatprep.subr.bf16.mxu1 %v2102_v20  ;;  %v2191_v19 = vld [vmem:[%s2888_s1 + $0x5e0] ss:$24 sps:$4 sm:$0xff]   ;;  %v1689_v20 = vpack.c.bf16 %v1084_v17, %v1082_v16 }
  0x85   :  { %1630 = vmatprep.subr.bf16.mxu0 %v2105_v21  ;;  %928 = vmatprep.mubr.f32.mxu1 %v2391_v62  ;;  %v1081_v21 = vld [vmem:[%s2890_s3] sm:$0xff] }
  0x86   :  { %1070 = vmatprep.mubr.f32.mxu0 %v2391_v62  ;;  %v2117_v62 = vld [vmem:[%s2888_s1 + $0x3a4] ss:$24 sps:$4 sm:$0xff]  }
  0x87   :  { %1504 = vmatpush1.bf16.msra.mxu1 %v2104_v22  ;;  %v1083_v22 = vld [vmem:[%s2890_s3 + $0x10] sm:$0xff] }
  0x88   :  { %1632 = vmatpush1.bf16.msra.mxu0 %v2107_v23  ;;  %1506 = vmatprep.subr.bf16.mxu1 %v2108_v24  ;;  %v1691_v23 = vpack.c.bf16 %v1083_v22, %v1081_v21  ;;  %v1086_v24 = vld [vmem:[%s2890_s3 + $0x28] sm:$0xff] }
  0x89   :  { %1634 = vmatprep.subr.bf16.mxu0 %v2111_v54  ;;  %v1085_v54 = vld [vmem:[%s2890_s3 + $0x20] sm:$0xff] }
  0x8b   :  { %1508 = vmatpush1.bf16.msra.mxu1 %v2110_v25  ;;  %v2193_v25 = vmov 0.0  }
  0x8c   :  { %1636 = vmatpush1.bf16.msra.mxu0 %v2113_v26  ;;  %1510 = vmatprep.subr.bf16.mxu1 %v2114_v27  ;;  %v1077_v26 = vld [vmem:[%s2891_s4] sm:$0xff]  ;;  %v1078_v27 = vld [vmem:[%s2891_s4 + $0x8] sm:$0xff] }
  0x8d   :  { %1638 = vmatprep.subr.bf16.mxu0 %v2117_v62  ;;  %v1080_v62 = vld [vmem:[%s2891_s4 + $0x18] sm:$0xff] }
  0x8f   :  { %1512 = vmatpush1.bf16.msra.mxu1 %v2116_v28  ;;  %v2856_v28 = vsub.s32 0, %v2341_v42 }
  0x90   :  { %1640 = vmatpush1.bf16.msra.mxu0 %v2119_v29  ;;  %1514 = vmatprep.subr.bf16.mxu1 %v2120_v30  ;;  %v597_v29 = vld [vmem:[%s2892_s2] sm:$0x3f]  ;;  %v2862_v30 = vsub.s32 1, %v2341_v42 }
  0x91   :  { %1642 = vmatprep.subr.bf16.mxu0 %v2123_v31  ;;  %v602_v31 = vrot.slane %v597_v29, %v2856_v28 }
  0x93   :  { %1516 = vmatpush1.bf16.msra.mxu1 %v2122_v32  ;;  %v606_v32 = vrot.slane %v597_v29, %v2862_v30 }
  0x94   :  { %1644 = vmatpush1.bf16.msra.mxu0 %v2125_v33  ;;  %1518 = vmatprep.subr.bf16.mxu1 %v2126_v34 }
  0x95   :  { %1646 = vmatprep.subr.bf16.mxu0 %v2129_v35 }
  0x97   :  { %1520 = vmatpush1.bf16.msra.mxu1 %v2128_v36 }
  0x98   :  { %1648 = vmatpush1.bf16.msra.mxu0 %v2131_v37  ;;  %1522 = vmatprep.subr.bf16.mxu1 %v2132_v38 }
  0x99   :  { %1650 = vmatprep.subr.bf16.mxu0 %v2135_v39 }
  0x9b   :  { %1524 = vmatpush1.bf16.msra.mxu1 %v2134_v40 }
  0x9c   :  { %1652 = vmatpush1.bf16.msra.mxu0 %v2137_v41  ;;  %1526 = vmatprep.subr.bf16.mxu1 %v2138_v43  ;;  %v609_v41 = vsub.s32 2, %v2341_v42  ;;  %v613_v43 = vsub.s32 3, %v2341_v42 }
  0x9d   :  { %1654 = vmatprep.subr.bf16.mxu0 %v2141_v44 }
  0x9e   :  { %v610_v44 = vrot.slane %v597_v29, %v609_v41 }
  0x9f   :  { %1528 = vmatpush1.bf16.msra.mxu1 %v2140_v45  ;;  %v617_v45 = vsub.s32 4, %v2341_v42 }
  0xa0   :  { %1656 = vmatpush1.bf16.msra.mxu0 %v2143_v46  ;;  %1530 = vmatprep.subr.bf16.mxu1 %v2144_v47  ;;  %v614_v46 = vrot.slane %v597_v29, %v613_v43  ;;  %v621_v47 = vsub.s32 5, %v2341_v42 }
  0xa1   :  { %1658 = vmatprep.subr.bf16.mxu0 %v2147_v48 }
  0xa3   :  { %1532 = vmatpush1.bf16.msra.mxu1 %v2146_v49 }
  0xa4   :  { %1660 = vmatpush1.bf16.msra.mxu0 %v2149_v50  ;;  %1534 = vmatprep.subr.bf16.mxu1 %v2150_v51  ;;  %v618_v51 = vrot.slane %v597_v29, %v617_v45 }
  0xa5   :  { %1662 = vmatprep.subr.bf16.mxu0 %v2153_v52 }
  0xa7   :  { %1536 = vmatpush1.bf16.msra.mxu1 %v2152_v53 }
  0xa8   :  { %1664 = vmatpush1.bf16.msra.mxu0 %v2155_v55  ;;  %1538 = vmatprep.subr.bf16.mxu1 %v2156_v56  ;;  %v622_v56 = vrot.slane %v597_v29, %v621_v47 }
  0xa9   :  { %1666 = vmatprep.subr.bf16.mxu0 %v2159_v57 }
  0xab   :  { %1540 = vmatpush1.bf16.msra.mxu1 %v2158_v58 }
  0xac   :  { %1668 = vmatpush1.bf16.msra.mxu0 %v2161_v59  ;;  %1542 = vmatprep.subr.bf16.mxu1 %v2162_v61 }
  0xad   :  { %1670 = vmatprep.subr.bf16.mxu0 %v2165_v63 }
  0xaf   :  { %1544 = vmatpush1.bf16.msra.mxu1 %v2164_v0 }
  0xb0   :  { %1672 = vmatpush1.bf16.msra.mxu0 %v2167_v1  ;;  %1546 = vmatprep.subr.bf16.mxu1 %v2168_v2 }
  0xb1   :  { %1674 = vmatprep.subr.bf16.mxu0 %v2171_v3 }
  0xb3   :  { %1548 = vmatpush1.bf16.msra.mxu1 %v2170_v4 }
  0xb4   :  { %1676 = vmatpush1.bf16.msra.mxu0 %v2173_v5  ;;  %1550 = vmatprep.subr.bf16.mxu1 %v2174_v6 }
  0xb5   :  { %1678 = vmatprep.subr.bf16.mxu0 %v2177_v7 }
  0xb7   :  { %1552 = vmatpush1.bf16.msra.mxu1 %v2176_v8 }
  0xb8   :  { %1680 = vmatpush1.bf16.msra.mxu0 %v2179_v9  ;;  %1554 = vmatprep.subr.bf16.mxu1 %v2180_v10 }
  0xb9   :  { %1682 = vmatprep.subr.bf16.mxu0 %v2183_v11 }
  0xbb   :  { %1556 = vmatpush1.bf16.msra.mxu1 %v2182_v12 }
  0xbc   :  { %1684 = vmatpush1.bf16.msra.mxu0 %v2185_v13  ;;  %1558 = vmatprep.subr.bf16.mxu1 %v2186_v14 }
  0xbd   :  { %1686 = vmatprep.subr.bf16.mxu0 %v2189_v15 }
  0xbf   :  { %1560 = vmatpush1.bf16.msra.mxu1 %v2188_v18 }
  0xc0   :  { %1688 = vmatpush1.bf16.msra.mxu0 %v2191_v19  ;;  %1693 = vmatprep.subr.bf16.mxu1 %v1689_v20 }
  0xc1   :  { %1690 = vmatprep.subr.bf16.mxu0 %v1689_v20 }
  0xc2   :  { %929 = vmatmul.mubr.f32.vlgmr.msra.gmra.mrb[2].mxu1 %v2384_v60 }
  0xc3   :  { %1071 = vmatmul.mubr.f32.vlgmr.msra.gmra.mrb[2].mxu0 %v2384_v60  ;;  %1695 = vmatpush1.bf16.msra.mxu1 %v1691_v23  ;;  %v1079_v60 = vld [vmem:[%s2891_s4 + $0x10] sm:$0xff] }
  0xc4   :  { %1692 = vmatpush1.bf16.msra.mxu0 %v1691_v23  ;;  %1694 = vmatprep.subr.mxu1 %v1086_v24 }
  0xc5   :  { %1104 = vmatprep.subr.mxu0 %v1086_v24  ;;  %1164 = vmatprep.mubr.f32.mxu0 %v2193_v25 }
  0xc6   :  { %1176 = vmatprep.mubr.f32.mxu1 %v2193_v25 }
  0xc7   :  { %1696 = vmatpush1.msra.mxu1 %v1085_v54 }
  0xc8   :  { %1105 = vmatpush1.msra.mxu0 %v1085_v54  ;;  %1302 = vmatmul.mubr.msk.f32.vlgmr.msra.gmra.mrb[4].mxu1 %vm1087_vm0, %v1079_v60 }
  0xc9   :  { %1300 = vmatmul.mubr.msk.f32.vlgmr.msra.gmra.mrb[4].mxu0 %vm1087_vm0, %v1077_v26  ;;  %1182 = vmatprep.mubr.f32.mxu1 %v2193_v25 }
  0xca   :  { %1170 = vmatprep.mubr.f32.mxu0 %v2193_v25 }
  0xcc   :  { %1303 = vmatmul.mubr.msk.f32.gmra.mrb[6].mxu1 %vm1087_vm0, %v1080_v62 }
  0xcd   :  { %1301 = vmatmul.mubr.msk.f32.gmra.mrb[6].mxu0 %vm1087_vm0, %v1078_v27 }
 0x115   :  { %v717_v33 = vpop.f32.mrb[0].mxu1 }
 0x116   :  { %v788_v34 = vpop.f32.mrb[0].mxu0  ;;  %v718_v35 = vadd.f32 %v717_v33, %v602_v31  ;;  %v719_v36 = vpop.f32.mrb[1].mxu1 }
 0x117   :  { %v790_v37 = vpop.f32.mrb[1].mxu0  ;;  %v720_v38 = vadd.f32 %v719_v36, %v606_v32 }
 0x118   :  { %v789_v39 = vadd.f32 %v788_v34, %v718_v35 }
 0x119   :  { %v791_v40 = vadd.f32 %v790_v37, %v720_v38 }
 0x11a   :  { %v1192_v57 = vrot.slane %v789_v39, %v2856_v28  ;;  %v1245_v58 = vrot.slane %v789_v39, %v2862_v30 }
 0x11b   :  { %v1196_v59 = vrot.slane %v791_v40, %v2856_v28  ;;  %v1249_v42 = vrot.slane %v791_v40, %v2862_v30 }
 0x195   :  { %v930_v48 = vpop.f32.mrb[2].mxu1 }
 0x196   :  { %v1072_v49 = vpop.f32.mrb[2].mxu0  ;;  %v1701_v50 = vadd.f32 %v930_v48, %v610_v44  ;;  %v932_v52 = vpop.f32.mrb[3].mxu1 }
 0x197   :  { %v1074_v53 = vpop.f32.mrb[3].mxu0  ;;  %v1702_v55 = vadd.f32 %v932_v52, %v614_v46  ;;  %v1703_v0 = vadd.f32 %v1072_v49, %v618_v51 }
 0x198   :  { %v1202_v61 = vrot.slane %v1701_v50, %v2856_v28  ;;  %v1255_v63 = vrot.slane %v1701_v50, %v2862_v30  ;;  %v1704_v3 = vadd.f32 %v1074_v53, %v622_v56 }
 0x199   :  { %v1206_v1 = vrot.slane %v1702_v55, %v2856_v28  ;;  %v1259_v2 = vrot.slane %v1702_v55, %v2862_v30  ;;  %v1220_v16 = vrot.slane %v1703_v0, %v2856_v28  ;;  %v1273_v19 = vrot.slane %v1703_v0, %v2862_v30 }
 0x19a   :  { %v1224_v24 = vrot.slane %v1704_v3, %v2856_v28  ;;  %v1277_v62 = vrot.slane %v1704_v3, %v2862_v30 }
 0x19b   :  { %v1178_v5 = vpop.f32.mrb[4].mxu1 }
 0x19c   :  { %v1166_v4 = vpop.f32.mrb[4].mxu0  ;;  %v1250_v8 = vmul.f32 %v1245_v58, %v1178_v5  ;;  %v1260_v9 = vmul.f32 %v1255_v63, %v1178_v5  ;;  %v1180_v11 = vpop.f32.mrb[5].mxu1 }
 0x19d   :  { %v1197_v6 = vmul.f32 %v1192_v57, %v1166_v4  ;;  %v1207_v7 = vmul.f32 %v1202_v61, %v1166_v4  ;;  %v1168_v10 = vpop.f32.mrb[5].mxu0  ;;  %v1251_v14 = vmul.f32 %v1249_v42, %v1180_v11  ;;  %v1261_v15 = vmul.f32 %v1259_v2, %v1180_v11 }
 0x19e   :  { %v1198_v12 = vmul.f32 %v1196_v59, %v1168_v10  ;;  %v1208_v13 = vmul.f32 %v1206_v1, %v1168_v10  ;;  %v1264_v18 = vrot.slane %v1260_v9, 4 }
 0x19f   :  { %v1211_v17 = vrot.slane %v1207_v7, 4  ;;  %v1265_v21 = vrot.slane %v1261_v15, 4  ;;  %v1184_v23 = vpop.f32.mrb[6].mxu1 }
 0x1a0   :  { %v1212_v20 = vrot.slane %v1208_v13, 4  ;;  %v1172_v22 = vpop.f32.mrb[6].mxu0  ;;  %v1268_v25 = vadd.f32 %v1264_v18, %v1250_v8  ;;  %v1186_v27 = vpop.f32.mrb[7].mxu1  ;;  %v1278_v32 = vmul.f32 %v1273_v19, %v1184_v23  ;;  %v1284_v38 = vrot.slane %v1184_v23, 4 }
 0x1a1   :  { %v1215_v54 = vadd.f32 %v1211_v17, %v1197_v6  ;;  %v1225_v26 = vmul.f32 %v1220_v16, %v1172_v22  ;;  %v1174_v60 = vpop.f32.mrb[7].mxu0  ;;  %v1269_v31 = vadd.f32 %v1265_v21, %v1251_v14  ;;  %v1231_v34 = vrot.slane %v1172_v22, 4 }
 0x1a2   :  { %v1216_v29 = vadd.f32 %v1212_v20, %v1198_v12  ;;  %v1226_v35 = vmul.f32 %v1224_v24, %v1174_v60  ;;  %v1279_v36 = vmul.f32 %v1277_v62, %v1186_v27  ;;  %v1280_v37 = vadd.f32 %v1278_v32, %v1268_v25 }
 0x1a3   :  { %v1227_v33 = vadd.f32 %v1225_v26, %v1215_v54  ;;  %v1232_v39 = vrot.slane %v1174_v60, 4  ;;  %v1285_v43 = vrot.slane %v1186_v27, 4 }
 0x1a4   :  { %v1228_v41 = vadd.f32 %v1226_v35, %v1216_v29  ;;  %v1281_v28 = vadd.f32 %v1279_v36, %v1269_v31  ;;  %v1288_v44 = vadd.f32 %v1284_v38, %v1280_v37 }
 0x1a5   :  { %v1235_v40 = vadd.f32 %v1231_v34, %v1227_v33 }
 0x1a6   :  { %v1236_v45 = vadd.f32 %v1232_v39, %v1228_v41  ;;  %v1289_v46 = vadd.f32 %v1285_v43, %v1281_v28 }
 0x1a8   :  { %v1239_v47 = vcombine.low %v1235_v40, %v1236_v45  ;;  %v1292_v48 = vcombine.low %v1288_v44, %v1289_v46 }
 0x1aa   :  { %1241 = vst [vmem:[%s2893_s5] sm:$0x77] %v1239_v47  ;;  %1304 = vst [vmem:[%s2893_s5 + $0x8] sm:$0x77] %v1292_v48 }

</bundles_post_ra>
